<compile_context>
chip_gen: v7x
topology: tpu7x:2x2x1
jax: 0.10.0
libtpu: 0.0.40
codegen_flags: <defaults>
</compile_context>

<pallas_src>
import functools

import jax
import jax.numpy as jnp
from jax import lax
from jax.experimental import pallas as pl
from jax.experimental.pallas import tpu as pltpu


@functools.lru_cache(maxsize=None)
def _vmem_limit_bytes():
    """Generation-aware VMEM budget: ~3/4 of physical VMEM, capped at 100 MiB.

    v7x (64 MiB physical) -> 48 MiB; v5e/v6e (128 MiB physical) -> 96 MiB.
    """
    try:
        cap = int(pltpu.get_tpu_info().vmem_capacity_bytes)
    except Exception:
        cap = 64 * 1024 * 1024  # conservative fallback (v7x-sized)
    return max(32 * 1024 * 1024, min((cap * 3) // 4, 100 * 1024 * 1024))


# ----------------------------------------------------------------------------
# Kernel 1: Bjorck orthonormalization (project_weights path).
#   Net effect of project_weights():  W <- bjorck_orthonormalize(W)
#   with W (out_features, in_features), order=1, beta=0.5, 20 iters:
#       W <- (1+beta)*W - beta * W @ (W^T @ W)
#   We carry A with the small dimension last (A = W^T when out<=in, else W),
#   which is algebraically identical and keeps the Gram matrix small:
#       A <- (1+beta)*A - beta * A @ (A^T A)
#   The loop contains only:
#     * Gram  = dot_general(A, A, contract dim 0 of both)   (lhs-transposed)
#     * A@G   = dot_general(A, G, ((1,),(0,)))               (canonical)
#   -> no XLU transpose inside the 20-iteration loop.
# ----------------------------------------------------------------------------
def _bjorck_kernel(w_ref, o_ref, *, iters, beta, bf16_iters, transpose_out):
    w = w_ref[...].astype(jnp.float32)
    out_f, in_f = w.shape                      # static at trace time
    carried_is_wt = out_f <= in_f
    a = w.T if carried_is_wt else w            # at most one transpose, pre-loop

    def step(a, dt):
        al = a.astype(dt)
        gram = lax.dot_general(al, al, (((0,), (0,)), ((), ())),
                               preferred_element_type=jnp.float32)
        ag = lax.dot_general(al, gram.astype(dt), (((1,), (0,)), ((), ())),
                             preferred_element_type=jnp.float32)
        return (1.0 + beta) * a - beta * ag    # update carried in f32

    if bf16_iters > 0:
        a = lax.fori_loop(0, bf16_iters, lambda _, a: step(a, jnp.bfloat16), a)
    if iters - bf16_iters > 0:
        a = lax.fori_loop(0, iters - bf16_iters,
                          lambda _, a: step(a, jnp.float32), a)

    if carried_is_wt != bool(transpose_out):   # at most one transpose, post-loop
        a = a.T
    o_ref[...] = a.astype(o_ref.dtype)


def project_weights(weight, *, iters=20, beta=0.5, bf16_iters=0,
                    transpose_out=False):
    """weight: (out_features, in_features) -> Bjorck-orthonormalized weight.

    If transpose_out, the result is returned as (in_features, out_features),
    ready for a lane-dense forward matmul (no wrapper-side transpose later).
    bf16_iters > 0 runs the first iterations with bf16 matmul inputs (f32
    accumulate/update) and the remaining ones fully in f32.

    Note: beta=0.5 Bjorck converges only for spectral norm < sqrt(3); the
    orthogonal init below guarantees this (all singular values = stdv << 1).
    Pre-scale arbitrary trained weights before projecting if needed.
    """
    out_f, in_f = weight.shape
    bf16_iters = max(0, min(int(bf16_iters), int(iters)))
    out_shape = (in_f, out_f) if transpose_out else (out_f, in_f)
    kernel = functools.partial(_bjorck_kernel, iters=iters, beta=beta,
                               bf16_iters=bf16_iters,
                               transpose_out=transpose_out)
    # Single-block kernel: W, Gram and both products live in VMEM. Fine for
    # layer-sized weights; see TODO(synk) at top for very large weights.
    return pl.pallas_call(
        kernel,
        out_shape=jax.ShapeDtypeStruct(out_shape, weight.dtype),
        in_specs=[pl.BlockSpec(memory_space=pltpu.MemorySpace.VMEM)],
        out_specs=pl.BlockSpec(memory_space=pltpu.MemorySpace.VMEM),
        compiler_params=pltpu.CompilerParams(
            vmem_limit_bytes=_vmem_limit_bytes()),
    )(weight)


# ----------------------------------------------------------------------------
# Kernel 2: dense linear forward  y = x @ Wt + b
#   x:  (batch, in_features)
#   wt: (in_features, out_features)  (from project_weights(transpose_out=True))
#   b:  (1, out_features) f32, optional
# Two variants:
#   * resident: the whole (K, N) weight lives in VMEM; grid over M only, one
#     dot per step, no accumulator scratch.  Weight streams from HBM once.
#   * streamed: (M, N, K) grid with an f32 accumulator scratch; bias added on
#     the last K step; lane-dense output tiles; megacore semantics.
# ----------------------------------------------------------------------------
def _linear_resident_kernel(*refs, has_bias):
    if has_bias:
        x_ref, wt_ref, b_ref, o_ref = refs
    else:
        x_ref, wt_ref, o_ref = refs
    acc = jnp.dot(x_ref[...], wt_ref[...], preferred_element_type=jnp.float32)
    if has_bias:
        acc = acc + b_ref[...]                      # bias already f32
    o_ref[...] = acc.astype(o_ref.dtype)


def _linear_tiled_kernel(*refs, has_bias):
    if has_bias:
        x_ref, wt_ref, b_ref, o_ref, acc_ref = refs
    else:
        x_ref, wt_ref, o_ref, acc_ref = refs
    k = pl.program_id(2)

    @pl.when(k == 0)
    def _():
        acc_ref[...] = jnp.zeros_like(acc_ref)

    acc_ref[...] += jnp.dot(x_ref[...], wt_ref[...],
                            preferred_element_type=jnp.float32)

    @pl.when(k == pl.num_programs(2) - 1)
    def _():
        acc = acc_ref[...]
        if has_bias:
            acc = acc + b_ref[...]                  # bias already f32
        o_ref[...] = acc.astype(o_ref.dtype)


def _pick_tile(dim, target, align):
    """Tile for one dim: `target` (floored to an `align` multiple) when the
    dim is at least that big, else the dim rounded up to `align` (single
    padded block).  Never returns a tile larger than needed for the dim."""
    target = max(align, (target // align) * align)
    if dim >= target:
        return target
    return ((dim + align - 1) // align) * align


def dense_linear_forward(x, weight_t, bias=None, *, tm=512, tn=512, tk=512,
                         compute_dtype=jnp.bfloat16, weight_resident=None,
                         out_dtype=None):
    """x: (B, in), weight_t: (in, out) [already projected+transposed],
    bias: (out,) or None -> (B, out).

    compute_dtype: dtype of the MXU operands (default bfloat16; the
      accumulator and bias add stay f32).  Pass None to keep the caller's
      dtype (full f32 numerics).
    weight_resident: True/False to force the resident / streamed variant,
      None to auto-select based on the generation-aware VMEM budget.
    Tiles: 256-512 tiles are the right range on v5e, v6e and v7x alike;
      non-divisible dims are zero-padded to tile multiples and sliced back.
    """
    M, K = x.shape
    Kw, N = weight_t.shape
    assert K == Kw, (K, Kw)
    out_dtype = out_dtype or x.dtype
    cdt = compute_dtype if compute_dtype is not None else x.dtype
    vmem_limit = _vmem_limit_bytes()

    tm = _pick_tile(M, tm, 8)
    tn = _pick_tile(N, tn, 128)
    tk = _pick_tile(K, tk, 128)
    M_p = pl.cdiv(M, tm) * tm
    K_p = pl.cdiv(K, tk) * tk
    N_p = pl.cdiv(N, tn) * tn

    # Zero-pad to tile multiples (exact: zero K-padding contributes nothing).
    xp = x if (M_p, K_p) == (M, K) else jnp.pad(x, ((0, M_p - M), (0, K_p - K)))
    wp = (weight_t if (K_p, N_p) == (K, N)
          else jnp.pad(weight_t, ((0, K_p - K), (0, N_p - N))))
    xp = xp.astype(cdt)
    wp = wp.astype(cdt)

    has_bias = bias is not None
    if has_bias:
        bp = bias if N_p == N else jnp.pad(bias, (0, N_p - N))
        bp = bp.reshape(1, N_p).astype(jnp.float32)

    cbytes = jnp.dtype(cdt).itemsize
    obytes = jnp.dtype(out_dtype).itemsize

    if weight_resident is None:
        # Conservative: assume double-buffering on every operand + output.
        need = (2 * (K_p * N_p + tm * K_p) * cbytes
                + 2 * tm * N_p * obytes
                + (2 * N_p * 4 if has_bias else 0))
        weight_resident = need <= int(0.8 * vmem_limit)

    cost = pl.CostEstimate(
        flops=2 * M_p * N_p * K_p,
        transcendentals=0,
        bytes_accessed=(M_p * K_p * cbytes + K_p * N_p * cbytes
                        + M_p * N_p * obytes + (N_p * 4 if has_bias else 0)),
    )

    if weight_resident:
        # Whole (K, N) weight resident in VMEM: it streams from HBM once,
        # regardless of how many M tiles there are.
        grid = (M_p // tm,)
        in_specs = [pl.BlockSpec((tm, K_p), lambda i: (i, 0)),
                    pl.BlockSpec((K_p, N_p), lambda i: (0, 0))]
        args = [xp, wp]
        if has_bias:
            in_specs.append(pl.BlockSpec((1, N_p), lambda i: (0, 0)))
            args.append(bp)
        out = pl.pallas_call(
            functools.partial(_linear_resident_kernel, has_bias=has_bias),
            out_shape=jax.ShapeDtypeStruct((M_p, N_p), out_dtype),
            grid_spec=pltpu.PrefetchScalarGridSpec(
                num_scalar_prefetch=0, grid=grid,
                in_specs=in_specs,
                out_specs=pl.BlockSpec((tm, N_p), lambda i: (i, 0))),
            compiler_params=pltpu.CompilerParams(
                dimension_semantics=("parallel",),
                vmem_limit_bytes=vmem_limit),
            cost_estimate=cost,
        )(*args)
    else:
        # Streamed (M, N, K) tiled path with f32 accumulator scratch.
        # If profiling shows exposed DMA on long K grids, sweep
        # pipeline_mode=pl.Buffered(3) on the weight BlockSpec below.
        grid = (M_p // tm, N_p // tn, K_p // tk)
        in_specs = [pl.BlockSpec((tm, tk), lambda i, j, k: (i, k)),
                    pl.BlockSpec((tk, tn), lambda i, j, k: (k, j))]
        args = [xp, wp]
        if has_bias:
            in_specs.append(pl.BlockSpec((1, tn), lambda i, j, k: (0, j)))
            args.append(bp)
        out = pl.pallas_call(
            functools.partial(_linear_tiled_kernel, has_bias=has_bias),
            out_shape=jax.ShapeDtypeStruct((M_p, N_p), out_dtype),
            grid_spec=pltpu.PrefetchScalarGridSpec(
                num_scalar_prefetch=0, grid=grid,
                in_specs=in_specs,
                out_specs=pl.BlockSpec((tm, tn), lambda i, j, k: (i, j)),
                scratch_shapes=[pltpu.VMEM((tm, tn), jnp.float32)]),
            compiler_params=pltpu.CompilerParams(
                dimension_semantics=("parallel", "parallel", "arbitrary"),
                vmem_limit_bytes=vmem_limit),
            cost_estimate=cost,
        )(*args)

    if (M_p, N_p) != (M, N):
        out = out[:M, :N]
    return out


# ----------------------------------------------------------------------------
# Deterministic parameter init (mirrors reset_parameters):
#   weight: orthogonal init (nn.init.orthogonal_ semantics) with gain
#           stdv = 1/sqrt(in_features);  bias: uniform(-stdv, stdv)
# ----------------------------------------------------------------------------
def init_dense_linear(key, in_features, out_features, dtype=jnp.float32):
    kw, kb = jax.random.split(key)
    rows, cols = out_features, in_features
    n_big, n_small = max(rows, cols), min(rows, cols)
    a = jax.random.normal(kw, (n_big, n_small), dtype=jnp.float32)
    q, r = jnp.linalg.qr(a)
    d = jnp.diagonal(r)
    q = q * jnp.where(d >= 0, 1.0, -1.0)[None, :]
    if rows < cols:
        q = q.T  # (rows, cols) with orthonormal rows
    stdv = 1.0 / float(in_features) ** 0.5
    weight = (stdv * q).astype(dtype)
    bias = jax.random.uniform(
        kb, (out_features,), minval=-stdv, maxval=stdv, dtype=jnp.float32
    ).astype(dtype)
    return weight, bias


if __name__ == "__main__":
    key = jax.random.PRNGKey(0)
    kx, kp, k2 = jax.random.split(key, 3)
    hi = jax.lax.Precision.HIGHEST

    # --- main (lane-aligned) shapes ------------------------------------------
    batch, in_features, out_features = 8, 256, 128
    x = jax.random.normal(kx, (batch, in_features), dtype=jnp.float32)
    weight, bias = init_dense_linear(kp, in_features, out_features)

    # project_weights(): W <- bjorck_orthonormalize(W), emitted as (in, out).
    wt_proj = project_weights(weight, iters=20, beta=0.5, transpose_out=True)

    # Reference Bjorck (literal PyTorch order-1 formulation) in plain JAX.
    w_ref = weight.astype(jnp.float32)
    for _ in range(20):
        wtw = jnp.dot(w_ref.T, w_ref, precision=hi)
        w_ref = 1.5 * w_ref - 0.5 * jnp.dot(w_ref, wtw, precision=hi)
    assert jnp.allclose(wt_proj.T, w_ref, atol=1e-3, rtol=1e-3)
    gram = jnp.dot(wt_proj.T, wt_proj, precision=hi)   # = W W^T (out <= in)
    assert jnp.allclose(gram, jnp.eye(out_features), atol=1e-3)

    # Mixed-precision projection option (bf16 early iters, f32 refinement).
    wt_mix = project_weights(weight, iters=20, beta=0.5, bf16_iters=15,
                             transpose_out=True)
    gram_mix = jnp.dot(wt_mix.T, wt_mix, precision=hi)
    assert jnp.allclose(gram_mix, jnp.eye(out_features), atol=1e-2)
    assert jnp.allclose(wt_mix, wt_proj, atol=5e-2)

    # Forward, default path: bf16 MXU inputs + VMEM-resident weight.
    y_bf16 = dense_linear_forward(x, wt_proj, bias)
    y_bf16_ref = (jnp.dot(x.astype(jnp.bfloat16), wt_proj.astype(jnp.bfloat16),
                          preferred_element_type=jnp.float32) + bias[None, :])
    assert jnp.allclose(y_bf16, y_bf16_ref, atol=1e-2, rtol=1e-2)

    # Forward, full-f32 streamed path (multi-step K grid -> accumulator path).
    y_f32 = dense_linear_forward(x, wt_proj, bias, compute_dtype=None,
                                 weight_resident=False, tm=8, tn=128, tk=128)
    y_ref = jnp.dot(x, wt_proj, precision=hi) + bias[None, :]
    assert jnp.allclose(y_f32, y_ref, atol=1e-3, rtol=1e-3)

    # bias=None variant (no bias stream allocated at all).
    y_nb = dense_linear_forward(x, wt_proj, None, compute_dtype=None)
    assert jnp.allclose(y_nb, jnp.dot(x, wt_proj, precision=hi),
                        atol=1e-3, rtol=1e-3)

    # Non-128-multiple shapes: wrapper pads to tile multiples and slices back.
    b2, in2, out2 = 10, 200, 96
    ka, kb2, kw2 = jax.random.split(k2, 3)
    x2 = jax.random.normal(ka, (b2, in2), dtype=jnp.float32)
    w2t = jax.random.normal(kw2, (in2, out2), dtype=jnp.float32) / (in2 ** 0.5)
    bias2 = jax.random.uniform(kb2, (out2,), minval=-0.1, maxval=0.1,
                               dtype=jnp.float32)
    y2_ref = jnp.dot(x2, w2t, precision=hi) + bias2[None, :]
    y2_f32 = dense_linear_forward(x2, w2t, bias2, compute_dtype=None,
                                  weight_resident=False, tm=8, tn=128, tk=128)
    assert jnp.allclose(y2_f32, y2_ref, atol=1e-3, rtol=1e-3)
    y2_bf16 = dense_linear_forward(x2, w2t, bias2)     # resident bf16 default
    y2_bf16_ref = (jnp.dot(x2.astype(jnp.bfloat16), w2t.astype(jnp.bfloat16),
                           preferred_element_type=jnp.float32)
                   + bias2[None, :])
    assert jnp.allclose(y2_bf16, y2_bf16_ref, atol=1e-2, rtol=1e-2)

    jax.block_until_ready((y_bf16, y_f32, y_nb, y2_f32, y2_bf16))
    print("KERNEL_OK")
</pallas_src>

<mosaic_0001>
module attributes {stable_mosaic.version = 11 : i64} {
  func.func @_bjorck_kernel(%arg0: memref<128x256xf32, #tpu.memory_space<vmem>>, %arg1: memref<256x128xf32, #tpu.memory_space<vmem>>) attributes {dimension_semantics = [], scalar_prefetch = 0 : i64, scratch_operands = 0 : i64, tpu.core_type = #tpu.core_type<tc>} {
    %c0 = arith.constant 0 : index
    %c0_0 = arith.constant 0 : index
    %0 = vector.load %arg0[%c0, %c0_0] : memref<128x256xf32, #tpu.memory_space<vmem>>, vector<128x256xf32>
    %1 = tpu.transpose %0, [1, 0] : vector<128x256xf32> -> vector<256x128xf32>
    %c0_i32 = arith.constant 0 : i32
    %c20_i32 = arith.constant 20 : i32
    %2 = arith.addi %c0_i32, %c20_i32 : i32
    %c1_i32 = arith.constant 1 : i32
    %3 = scf.for %arg2 = %c0_i32 to %2 step %c1_i32 iter_args(%arg3 = %1) -> (vector<256x128xf32>)  : i32 {
      %cst = arith.constant dense<0.000000e+00> : vector<128x128xf32>
      %5 = tpu.matmul %arg3, %arg3, %cst {dimension_numbers = #tpu.dot_dimension_numbers<[0], [0], [1], [1], [0, 1, 1, 1], [], []>} : vector<256x128xf32>, vector<256x128xf32>, vector<128x128xf32> -> vector<128x128xf32>
      %cst_3 = arith.constant dense<0.000000e+00> : vector<256x128xf32>
      %6 = tpu.matmul %arg3, %5, %cst_3 {dimension_numbers = #tpu.dot_dimension_numbers<[1], [0], [0], [1], [0, 0, 1, 1], [], []>} : vector<256x128xf32>, vector<128x128xf32>, vector<256x128xf32> -> vector<256x128xf32>
      %cst_4 = arith.constant 1.500000e+00 : f32
      %7 = vector.broadcast %cst_4 : f32 to vector<256x128xf32>
      %8 = arith.mulf %7, %arg3 : vector<256x128xf32>
      %cst_5 = arith.constant 5.000000e-01 : f32
      %9 = vector.broadcast %cst_5 : f32 to vector<256x128xf32>
      %10 = arith.mulf %9, %6 : vector<256x128xf32>
      %11 = arith.subf %8, %10 : vector<256x128xf32>
      scf.yield %11 : vector<256x128xf32>
    }
    %c0_1 = arith.constant 0 : index
    %c0_2 = arith.constant 0 : index
    %4 = vector.load %arg1[%c0_1, %c0_2] : memref<256x128xf32, #tpu.memory_space<vmem>>, vector<256x128xf32>
    tpu.vector_store %arg1[%c0_1, %c0_2], %3 {strides = array<i32>} : memref<256x128xf32, #tpu.memory_space<vmem>>, vector<256x128xf32>,
    return
  }
}

</mosaic_0001>

<bundles_post_ra>
// kernel: tpu_custom_call.1
= control target key start
LH: loop header
LB: loop body
LE: loop exit
PB: predicated region body
PF: predicated region fallthrough
CT: control target
= control target key end

     0   :  { %6 = vsyncpa [#allocation3], 0  ;;  %s2341_s0 = inlined_call_operand.hbm [shape: f32[128,256], index: 0, kind: input, shape index: {}]   ;;  %s2342_s1 = inlined_call_operand.hbm [shape: f32[256,128], index: 1, kind: output, shape index: {}]  }
   0x1   :  { %7 = vsyncpa [#allocation4], 0  ;;  %s1803_s6 = smov [#allocation2]   ;;  %s1491_s10 = scalar_lea.hbm %s2341_s0, 4096 }
   0x2   :  { %s13_s7 = sshll.u32 %s1803_s6, 4  ;;  %p1492_p0 = scmp.ne.s32.totalorder %s2341_s0, %s1491_s10  ;;  %s14_s7 = int_to_ptr.vmem [resolvable:$true] %s13_s7 }
   0x3   :  { %p1495_p1 = scmp.lt.u32.totalorder %s1491_s10, %s2341_s0 }
   0x5   :  { %p1497_p2 = pnand %p1495_p1, %p1492_p0 }
   0x7   :  { %1500 = shalt.err (!%p1497_p2)
}
   0x8   :  { %s1501_s15 = scalar_lea.vmem %s14_s7, 4096  ;;  %p1506_p4 = scmp.lt.s32.totalorder %s14_s7, %s14_s7 }
   0x9   :  { %p1502_p3 = scmp.ne.s32.totalorder %s14_s7, %s1501_s15  ;;  %p1507_p5 = scmp.lt.s32.totalorder %s1501_s15, %s1501_s15 }
   0xb   :  { %p1508_p6 = por %p1507_p5, %p1506_p4 }
   0xd   :  { %p1509_p7 = pnand %p1508_p6, %p1502_p3 }
   0xf   :  { %1512 = shalt.err (!%p1509_p7)
}
  0x10   :  { %s1804_s16 = smov 256   ;;  %s1805_s17 = smov 16  }
  0x11   :  { %19 = dma.hbm_to_vmem [thread:$0]  %s2341_s0, 4096, %s14_s7, [#allocation3], %s1804_s16, %s1804_s16, %s1805_s17  }
  0x12   :  { %1667 = dma.done.wait [#allocation3], 4096  }
  0x13   :  { %1668 = vsyncadd [#allocation3], 4294963200  ;;  %v24_v0 = vld [vmem:[#allocation2 + $0x8] sm:$0xff]  ;;  %v23_v1 = vld [vmem:[#allocation2] sm:$0xff]  ;;  %s1895_s0 = smov 0  }
  0x14   :  { %87 = vxpose.xlu1.b32.start [1/16] %v24_v0, 128  ;;  %55 = vxpose.xlu0.b32.start [1/16] %v23_v1, 128  ;;  %v26_v2 = vld [vmem:[#allocation2 + $0x18] sm:$0xff]  ;;  %v25_v3 = vld [vmem:[#allocation2 + $0x10] sm:$0xff]  ;;  %v28_v4 = vld [vmem:[#allocation2 + $0x28] sm:$0xff] }
  0x15   :  { %v27_v5 = vld [vmem:[#allocation2 + $0x20] sm:$0xff]  ;;  %v30_v6 = vld [vmem:[#allocation2 + $0x38] sm:$0xff]  ;;  %v29_v7 = vld [vmem:[#allocation2 + $0x30] sm:$0xff] }
  0x16   :  { %v32_v8 = vld [vmem:[#allocation2 + $0x48] sm:$0xff]  ;;  %v31_v9 = vld [vmem:[#allocation2 + $0x40] sm:$0xff]  ;;  %v34_v10 = vld [vmem:[#allocation2 + $0x58] sm:$0xff] }
  0x17   :  { %v33_v11 = vld [vmem:[#allocation2 + $0x50] sm:$0xff]  ;;  %v36_v12 = vld [vmem:[#allocation2 + $0x68] sm:$0xff]  ;;  %v35_v13 = vld [vmem:[#allocation2 + $0x60] sm:$0xff] }
  0x18   :  { %88 = vxpose.xlu1.b32.cont [2/16] %v26_v2, 128  ;;  %56 = vxpose.xlu0.b32.cont [2/16] %v25_v3, 128  ;;  %v38_v14 = vld [vmem:[#allocation2 + $0x78] sm:$0xff]  ;;  %v37_v15 = vld [vmem:[#allocation2 + $0x70] sm:$0xff]  ;;  %v40_v16 = vld [vmem:[#allocation2 + $0x88] sm:$0xff] }
  0x19   :  { %v39_v17 = vld [vmem:[#allocation2 + $0x80] sm:$0xff]  ;;  %v42_v18 = vld [vmem:[#allocation2 + $0x98] sm:$0xff]  ;;  %v41_v19 = vld [vmem:[#allocation2 + $0x90] sm:$0xff] }
  0x1a   :  { %v44_v20 = vld [vmem:[#allocation2 + $0xa8] sm:$0xff]  ;;  %v43_v21 = vld [vmem:[#allocation2 + $0xa0] sm:$0xff]  ;;  %v46_v22 = vld [vmem:[#allocation2 + $0xb8] sm:$0xff] }
  0x1b   :  { %v45_v23 = vld [vmem:[#allocation2 + $0xb0] sm:$0xff]  ;;  %v48_v24 = vld [vmem:[#allocation2 + $0xc8] sm:$0xff]  ;;  %v47_v25 = vld [vmem:[#allocation2 + $0xc0] sm:$0xff] }
  0x1c   :  { %89 = vxpose.xlu1.b32.cont [3/16] %v28_v4, 128  ;;  %57 = vxpose.xlu0.b32.cont [3/16] %v27_v5, 128  ;;  %v50_v26 = vld [vmem:[#allocation2 + $0xd8] sm:$0xff]  ;;  %v49_v27 = vld [vmem:[#allocation2 + $0xd0] sm:$0xff]  ;;  %v52_v28 = vld [vmem:[#allocation2 + $0xe8] sm:$0xff] }
  0x1d   :  { %v51_v29 = vld [vmem:[#allocation2 + $0xe0] sm:$0xff]  ;;  %v54_v30 = vld [vmem:[#allocation2 + $0xf8] sm:$0xff]  ;;  %v53_v31 = vld [vmem:[#allocation2 + $0xf0] sm:$0xff] }
  0x20   :  { %90 = vxpose.xlu1.b32.cont [4/16] %v30_v6, 128  ;;  %58 = vxpose.xlu0.b32.cont [4/16] %v29_v7, 128 }
  0x24   :  { %91 = vxpose.xlu1.b32.cont [5/16] %v32_v8, 128  ;;  %59 = vxpose.xlu0.b32.cont [5/16] %v31_v9, 128 }
  0x28   :  { %92 = vxpose.xlu1.b32.cont [6/16] %v34_v10, 128  ;;  %60 = vxpose.xlu0.b32.cont [6/16] %v33_v11, 128 }
  0x2c   :  { %93 = vxpose.xlu1.b32.cont [7/16] %v36_v12, 128  ;;  %61 = vxpose.xlu0.b32.cont [7/16] %v35_v13, 128 }
  0x30   :  { %94 = vxpose.xlu1.b32.cont [8/16] %v38_v14, 128  ;;  %62 = vxpose.xlu0.b32.cont [8/16] %v37_v15, 128 }
  0x34   :  { %95 = vxpose.xlu1.b32.cont [9/16] %v40_v16, 128  ;;  %63 = vxpose.xlu0.b32.cont [9/16] %v39_v17, 128 }
  0x38   :  { %96 = vxpose.xlu1.b32.cont [10/16] %v42_v18, 128  ;;  %64 = vxpose.xlu0.b32.cont [10/16] %v41_v19, 128 }
  0x3c   :  { %97 = vxpose.xlu1.b32.cont [11/16] %v44_v20, 128  ;;  %65 = vxpose.xlu0.b32.cont [11/16] %v43_v21, 128 }
  0x40   :  { %98 = vxpose.xlu1.b32.cont [12/16] %v46_v22, 128  ;;  %66 = vxpose.xlu0.b32.cont [12/16] %v45_v23, 128 }
  0x44   :  { %99 = vxpose.xlu1.b32.cont [13/16] %v48_v24, 128  ;;  %67 = vxpose.xlu0.b32.cont [13/16] %v47_v25, 128 }
  0x48   :  { %100 = vxpose.xlu1.b32.cont [14/16] %v50_v26, 128  ;;  %68 = vxpose.xlu0.b32.cont [14/16] %v49_v27, 128 }
  0x4c   :  { %101 = vxpose.xlu1.b32.cont [15/16] %v52_v28, 128  ;;  %69 = vxpose.xlu0.b32.cont [15/16] %v51_v29, 128 }
  0x50   :  { %102 = vxpose.xlu1.b32.end [16/16] %v54_v30, 128  ;;  %70 = vxpose.xlu0.b32.end [16/16] %v53_v31, 128 }
  0x94   :  { %v103_v32 = vpop.trf.xlu1   ;;  %v71_v33 = vpop.trf.xlu0  }
  0x98   :  { %v104_v34 = vpop.trf.xlu1   ;;  %v72_v35 = vpop.trf.xlu0  }
  0x9c   :  { %v105_v36 = vpop.trf.xlu1   ;;  %v73_v37 = vpop.trf.xlu0  }
  0xa0   :  { %v106_v38 = vpop.trf.xlu1   ;;  %v74_v39 = vpop.trf.xlu0  }
  0xa4   :  { %v107_v40 = vpop.trf.xlu1   ;;  %v75_v41 = vpop.trf.xlu0  }
  0xa8   :  { %v108_v42 = vpop.trf.xlu1   ;;  %v76_v43 = vpop.trf.xlu0  }
  0xac   :  { %v109_v44 = vpop.trf.xlu1   ;;  %v77_v45 = vpop.trf.xlu0  }
  0xb0   :  { %v110_v46 = vpop.trf.xlu1   ;;  %v78_v47 = vpop.trf.xlu0  }
  0xb4   :  { %v111_v48 = vpop.trf.xlu1   ;;  %v79_v49 = vpop.trf.xlu0  }
  0xb8   :  { %v112_v50 = vpop.trf.xlu1   ;;  %v80_v51 = vpop.trf.xlu0  }
  0xbc   :  { %v113_v52 = vpop.trf.xlu1   ;;  %v81_v53 = vpop.trf.xlu0  }
  0xc0   :  { %v114_v54 = vpop.trf.xlu1   ;;  %v82_v55 = vpop.trf.xlu0  }
  0xc4   :  { %v115_v56 = vpop.trf.xlu1   ;;  %v83_v57 = vpop.trf.xlu0  }
  0xc8   :  { %v116_v58 = vpop.trf.xlu1   ;;  %v84_v59 = vpop.trf.xlu0  }
  0xcc   :  { %v117_v60 = vpop.trf.xlu1   ;;  %v85_v61 = vpop.trf.xlu0  }
  0xd0   :  { %v118_v62 = vpop.trf.xlu1   ;;  %v86_v63 = vpop.trf.xlu0  }
  0xd1 LB: > { %v1379_v0 = vpack.i.bf16 %v1797_v33, %v1733_v32  ;;  %997 = vmatprep.mubr.f32.mxu1 %v1797_v33  ;;  %v1381_v1 = vpack.i.bf16 %v1793_v35, %v1729_v34  ;;  %v1383_v2 = vpack.i.bf16 %v1789_v37, %v1725_v36  ;;  %v1385_v3 = vpack.i.bf16 %v1785_v39, %v1721_v38  ;;  %s124_s20 = sadd.s32 1, %s1801_s0   ;;  %s1801_s0 = sphi %s1895_s0, %s2408_s0   ;;  %v1797_v33 = vphi %v71_v33, %v2407_v33   ;;  %v1793_v35 = vphi %v72_v35, %v2406_v35   ;;  %v1789_v37 = vphi %v73_v37, %v2405_v37   ;;  %v1785_v39 = vphi %v74_v39, %v2404_v39   ;;  %v1781_v41 = vphi %v75_v41, %v2403_v41   ;;  %v1777_v43 = vphi %v76_v43, %v2402_v43   ;;  %v1773_v45 = vphi %v77_v45, %v2401_v45   ;;  %v1769_v47 = vphi %v78_v47, %v2400_v47   ;;  %v1765_v49 = vphi %v79_v49, %v2399_v49   ;;  %v1761_v51 = vphi %v80_v51, %v2398_v51   ;;  %v1757_v53 = vphi %v81_v53, %v2397_v53   ;;  %v1753_v55 = vphi %v82_v55, %v2396_v55   ;;  %v1749_v57 = vphi %v83_v57, %v2395_v57   ;;  %v1745_v59 = vphi %v84_v59, %v2394_v59   ;;  %v1741_v61 = vphi %v85_v61, %v2393_v61   ;;  %v1737_v63 = vphi %v86_v63, %v2392_v63   ;;  %v1733_v32 = vphi %v103_v32, %v2391_v32   ;;  %v1729_v34 = vphi %v104_v34, %v2390_v34   ;;  %v1725_v36 = vphi %v105_v36, %v2389_v36   ;;  %v1721_v38 = vphi %v106_v38, %v2388_v38   ;;  %v1717_v40 = vphi %v107_v40, %v2387_v40   ;;  %v1713_v42 = vphi %v108_v42, %v2386_v42   ;;  %v1709_v44 = vphi %v109_v44, %v2385_v44   ;;  %v1705_v46 = vphi %v110_v46, %v2384_v46   ;;  %v1701_v48 = vphi %v111_v48, %v2383_v48   ;;  %v1697_v50 = vphi %v112_v50, %v2382_v50   ;;  %v1693_v52 = vphi %v113_v52, %v2381_v52   ;;  %v1689_v54 = vphi %v114_v54, %v2380_v54   ;;  %v1685_v56 = vphi %v115_v56, %v2379_v56   ;;  %v1681_v58 = vphi %v116_v58, %v2378_v58   ;;  %v1677_v60 = vphi %v117_v60, %v2377_v60   ;;  %v1673_v62 = vphi %v118_v62, %v2376_v62  }
  0xd2   : > { %v1387_v4 = vpack.i.bf16 %v1781_v41, %v1717_v40  ;;  %v1045_v5 = vpack.c.bf16 %v1729_v34, %v1733_v32  ;;  %v1389_v6 = vpack.i.bf16 %v1777_v43, %v1713_v42  ;;  %v1047_v7 = vpack.c.bf16 %v1793_v35, %v1797_v33  ;;  %p2191_p8 = scmp.ge.s32.totalorder %s124_s20, 20   ;;  %s2408_s0 = smov %s124_s20 }
  0xd3   : > { %1380 = vxpose.xlu0.b32.start [1/16] %v1379_v0, 128  ;;  %v1049_v8 = vpack.c.bf16 %v1721_v38, %v1725_v36  ;;  %v1051_v9 = vpack.c.bf16 %v1785_v39, %v1789_v37  ;;  %v1053_v10 = vpack.c.bf16 %v1713_v42, %v1717_v40  ;;  %v1391_v11 = vpack.i.bf16 %v1773_v45, %v1709_v44  ;;  %s1806_s22 = smov (%p2191_p8), [#allocation5]  }
  0xd4   : > { %1046 = vmatprep.subr.bf16.mxu0 %v1045_v5  ;;  %v1055_v12 = vpack.c.bf16 %v1777_v43, %v1781_v41  ;;  %v1057_v13 = vpack.c.bf16 %v1705_v46, %v1709_v44  ;;  %v1393_v14 = vpack.i.bf16 %v1769_v47, %v1705_v46  ;;  %v1059_v15 = vpack.c.bf16 %v1769_v47, %v1773_v45  ;;  %s724_s23 = sshll.u32 (%p2191_p8), %s1806_s22, 4  ;;  %s725_s23 = int_to_ptr.vmem [resolvable:$true] %s724_s23 }
  0xd5   : > { %1048 = vmatpush3.bf16.msra.mxu0 %v1047_v7  ;;  %v1061_v16 = vpack.c.bf16 %v1697_v50, %v1701_v48  ;;  %v1395_v17 = vpack.i.bf16 %v1765_v49, %v1701_v48  ;;  %v1063_v18 = vpack.c.bf16 %v1761_v51, %v1765_v49  ;;  %v1065_v19 = vpack.c.bf16 %v1689_v54, %v1693_v52  ;;  %s1513_s24 = scalar_lea.vmem (%p2191_p8), %s725_s23, 4096  ;;  %p1518_p10 = scmp.lt.s32.totalorder (%p2191_p8), %s725_s23, %s725_s23 }
  0xd6   : > { %1050 = vmatprep.subr.bf16.mxu0 %v1049_v8  ;;  %v1397_v20 = vpack.i.bf16 %v1761_v51, %v1697_v50  ;;  %v1067_v21 = vpack.c.bf16 %v1753_v55, %v1757_v53  ;;  %v1069_v22 = vpack.c.bf16 %v1681_v58, %v1685_v56  ;;  %v1399_v23 = vpack.i.bf16 %v1757_v53, %v1693_v52  ;;  %p1514_p9 = scmp.ne.s32.totalorder (%p2191_p8), %s725_s23, %s1513_s24  ;;  %p1519_p11 = scmp.lt.s32.totalorder (%p2191_p8), %s1513_s24, %s1513_s24 }
  0xd7   : > { %1382 = vxpose.xlu0.b32.cont [2/16] %v1381_v1, 128  ;;  %v1071_v24 = vpack.c.bf16 %v1745_v59, %v1749_v57  ;;  %v1073_v25 = vpack.c.bf16 %v1673_v62, %v1677_v60  ;;  %v1401_v26 = vpack.i.bf16 %v1753_v55, %v1689_v54  ;;  %v1075_v27 = vpack.c.bf16 %v1737_v63, %v1741_v61 }
  0xd8   : > { %v1403_v28 = vpack.i.bf16 %v1749_v57, %v1685_v56  ;;  %v1405_v29 = vpack.i.bf16 %v1745_v59, %v1681_v58  ;;  %v1407_v30 = vpack.i.bf16 %v1741_v61, %v1677_v60  ;;  %v1409_v31 = vpack.i.bf16 %v1737_v63, %v1673_v62  ;;  %p1520_p12 = por (%p2191_p8), %p1519_p11, %p1518_p10 }
  0xd9   : > { %1052 = vmatpush3.bf16.msra.mxu0 %v1051_v9 }
  0xda   : > { %1054 = vmatprep.subr.bf16.mxu0 %v1053_v10  ;;  %p1521_p13 = pnand (%p2191_p8), %p1520_p12, %p1514_p9 }
  0xdb   : > { %1384 = vxpose.xlu0.b32.cont [3/16] %v1383_v2, 128 }
  0xdd   : > { %1056 = vmatpush3.bf16.msra.mxu0 %v1055_v12 }
  0xde   : > { %1058 = vmatprep.subr.bf16.mxu0 %v1057_v13 }
  0xdf   : > { %1386 = vxpose.xlu0.b32.cont [4/16] %v1385_v3, 128 }
  0xe1   : > { %1060 = vmatpush3.bf16.msra.mxu0 %v1059_v15 }
  0xe2   : > { %1062 = vmatprep.subr.bf16.mxu0 %v1061_v16 }
  0xe3   : > { %1388 = vxpose.xlu0.b32.cont [5/16] %v1387_v4, 128 }
  0xe5   : > { %1064 = vmatpush3.bf16.msra.mxu0 %v1063_v18 }
  0xe6   : > { %1066 = vmatprep.subr.bf16.mxu0 %v1065_v19 }
  0xe7   : > { %1390 = vxpose.xlu0.b32.cont [6/16] %v1389_v6, 128 }
  0xe9   : > { %1068 = vmatpush3.bf16.msra.mxu0 %v1067_v21 }
  0xea   : > { %1070 = vmatprep.subr.bf16.mxu0 %v1069_v22 }
  0xeb   : > { %1392 = vxpose.xlu0.b32.cont [7/16] %v1391_v11, 128 }
  0xed   : > { %1072 = vmatpush3.bf16.msra.mxu0 %v1071_v24 }
  0xee   : > { %1074 = vmatprep.subr.bf16.mxu0 %v1073_v25 }
  0xef   : > { %1394 = vxpose.xlu0.b32.cont [8/16] %v1393_v14, 128 }
  0xf1   : > { %1076 = vmatpush3.bf16.msra.mxu0 %v1075_v27 }
  0xf3   : > { %1396 = vxpose.xlu0.b32.cont [9/16] %v1395_v17, 128 }
  0xf7   : > { %1398 = vxpose.xlu0.b32.cont [10/16] %v1397_v20, 128 }
  0xfb   : > { %1400 = vxpose.xlu0.b32.cont [11/16] %v1399_v23, 128 }
  0xff   : > { %1402 = vxpose.xlu0.b32.cont [12/16] %v1401_v26, 128 }
 0x103   : > { %1404 = vxpose.xlu0.b32.cont [13/16] %v1403_v28, 128 }
 0x107   : > { %1406 = vxpose.xlu0.b32.cont [14/16] %v1405_v29, 128 }
 0x10b   : > { %1408 = vxpose.xlu0.b32.cont [15/16] %v1407_v30, 128 }
 0x10f   : > { %1410 = vxpose.xlu0.b32.end [16/16] %v1409_v31, 128 }
 0x153   : > { %v1411_v0 = vpop.trf.xlu0 }
 0x154   : > { %v1412_v1 = vunpack.i.l.bf16 %v1411_v0  ;;  %v1415_v2 = vunpack.i.h.bf16 %v1411_v0 }
 0x156   : > { %285 = vmatprep.mubr.f32.mxu0 %v1412_v1 }
 0x157   : > { %v1416_v3 = vpop.trf.xlu0  ;;  %286 = vmatmul.mubr.f32.vlgmr.msra.gmra.mrb[0].mxu0 %v1415_v2 }
 0x158   : > { %v1417_v4 = vunpack.i.l.bf16 %v1416_v3  ;;  %v1420_v5 = vunpack.i.h.bf16 %v1416_v3 }
 0x15a   : > { %290 = vmatprep.mubr.f32.mxu0 %v1417_v4 }
 0x15b   : > { %v1421_v6 = vpop.trf.xlu0  ;;  %291 = vmatmul.mubr.f32.gmra.mrb[2].mxu0 %v1420_v5 }
 0x15c   : > { %v1422_v7 = vunpack.i.l.bf16 %v1421_v6  ;;  %v1425_v8 = vunpack.i.h.bf16 %v1421_v6 }
 0x15e   : > { %295 = vmatprep.mubr.f32.mxu0 %v1422_v7 }
 0x15f   : > { %v1426_v9 = vpop.trf.xlu0  ;;  %296 = vmatmul.mubr.f32.gmra.mrb[4].mxu0 %v1425_v8 }
 0x160   : > { %v1427_v10 = vunpack.i.l.bf16 %v1426_v9  ;;  %v1430_v11 = vunpack.i.h.bf16 %v1426_v9 }
 0x162   : > { %300 = vmatprep.mubr.f32.mxu0 %v1427_v10 }
 0x163   : > { %v1431_v12 = vpop.trf.xlu0  ;;  %301 = vmatmul.mubr.f32.gmra.mrb[6].mxu0 %v1430_v11 }
 0x164   : > { %v1432_v13 = vunpack.i.l.bf16 %v1431_v12  ;;  %v1435_v14 = vunpack.i.h.bf16 %v1431_v12 }
 0x166   : > { %305 = vmatprep.mubr.f32.mxu0 %v1432_v13 }
 0x167   : > { %v1436_v15 = vpop.trf.xlu0  ;;  %306 = vmatmul.mubr.f32.gmra.mrb[8].mxu0 %v1435_v14 }
 0x168   : > { %v1437_v16 = vunpack.i.l.bf16 %v1436_v15  ;;  %v1440_v17 = vunpack.i.h.bf16 %v1436_v15 }
 0x16a   : > { %310 = vmatprep.mubr.f32.mxu0 %v1437_v16 }
 0x16b   : > { %v1441_v18 = vpop.trf.xlu0  ;;  %311 = vmatmul.mubr.f32.gmra.mrb[10].mxu0 %v1440_v17 }
 0x16c   : > { %v1442_v19 = vunpack.i.l.bf16 %v1441_v18  ;;  %v1445_v20 = vunpack.i.h.bf16 %v1441_v18 }
 0x16e   : > { %315 = vmatprep.mubr.f32.mxu0 %v1442_v19 }
 0x16f   : > { %v1446_v21 = vpop.trf.xlu0  ;;  %316 = vmatmul.mubr.f32.gmra.mrb[12].mxu0 %v1445_v20 }
 0x170   : > { %v1447_v22 = vunpack.i.l.bf16 %v1446_v21  ;;  %v1450_v23 = vunpack.i.h.bf16 %v1446_v21 }
 0x172   : > { %320 = vmatprep.mubr.f32.mxu0 %v1447_v22 }
 0x173   : > { %v1451_v24 = vpop.trf.xlu0  ;;  %321 = vmatmul.mubr.f32.gmra.mrb[14].mxu0 %v1450_v23 }
 0x174   : > { %v1452_v25 = vunpack.i.l.bf16 %v1451_v24  ;;  %v1455_v26 = vunpack.i.h.bf16 %v1451_v24 }
 0x176   : > { %325 = vmatprep.mubr.f32.mxu0 %v1452_v25 }
 0x177   : > { %v1456_v27 = vpop.trf.xlu0  ;;  %326 = vmatmul.mubr.f32.gmra.mrb[16].mxu0 %v1455_v26 }
 0x178   : > { %v1457_v28 = vunpack.i.l.bf16 %v1456_v27  ;;  %v1460_v29 = vunpack.i.h.bf16 %v1456_v27 }
 0x17a   : > { %330 = vmatprep.mubr.f32.mxu0 %v1457_v28 }
 0x17b   : > { %v1461_v30 = vpop.trf.xlu0  ;;  %331 = vmatmul.mubr.f32.gmra.mrb[18].mxu0 %v1460_v29 }
 0x17c   : > { %v1462_v31 = vunpack.i.l.bf16 %v1461_v30  ;;  %v1465_v0 = vunpack.i.h.bf16 %v1461_v30 }
 0x17e   : > { %335 = vmatprep.mubr.f32.mxu0 %v1462_v31 }
 0x17f   : > { %v1466_v1 = vpop.trf.xlu0  ;;  %336 = vmatmul.mubr.f32.gmra.mrb[20].mxu0 %v1465_v0 }
 0x180   : > { %v1467_v2 = vunpack.i.l.bf16 %v1466_v1  ;;  %v1470_v3 = vunpack.i.h.bf16 %v1466_v1 }
 0x182   : > { %340 = vmatprep.mubr.f32.mxu0 %v1467_v2 }
 0x183   : > { %v1471_v4 = vpop.trf.xlu0  ;;  %341 = vmatmul.mubr.f32.gmra.mrb[22].mxu0 %v1470_v3 }
 0x184   : > { %v1472_v5 = vunpack.i.l.bf16 %v1471_v4  ;;  %v1475_v6 = vunpack.i.h.bf16 %v1471_v4 }
 0x186   : > { %345 = vmatprep.mubr.f32.mxu0 %v1472_v5 }
 0x187   : > { %v1476_v7 = vpop.trf.xlu0  ;;  %346 = vmatmul.mubr.f32.gmra.mrb[24].mxu0 %v1475_v6 }
 0x188   : > { %v1477_v8 = vunpack.i.l.bf16 %v1476_v7  ;;  %v1480_v9 = vunpack.i.h.bf16 %v1476_v7 }
 0x18a   : > { %350 = vmatprep.mubr.f32.mxu0 %v1477_v8 }
 0x18b   : > { %v1481_v10 = vpop.trf.xlu0  ;;  %351 = vmatmul.mubr.f32.gmra.mrb[26].mxu0 %v1480_v9 }
 0x18c   : > { %v1482_v11 = vunpack.i.l.bf16 %v1481_v10  ;;  %v1485_v12 = vunpack.i.h.bf16 %v1481_v10 }
 0x18e   : > { %355 = vmatprep.mubr.f32.mxu0 %v1482_v11 }
 0x18f   : > { %v1486_v13 = vpop.trf.xlu0  ;;  %356 = vmatmul.mubr.f32.gmra.mrb[28].mxu0 %v1485_v12 }
 0x190   : > { %v1490_v14 = vunpack.i.h.bf16 %v1486_v13  ;;  %v1487_v15 = vunpack.i.l.bf16 %v1486_v13 }
 0x192   : > { %360 = vmatprep.mubr.f32.mxu0 %v1487_v15 }
 0x193   : > { %361 = vmatmul.mubr.f32.gmra.mrb[30].mxu0 %v1490_v14 }
 0x22a   : > { %v869_v16 = vpop.f32.mrb[0].mxu0 }
 0x22b   : > { %v870_v17 = vpop.f32.mrb[1].mxu0 }
 0x22c   : > { %v871_v18 = vadd.f32 %v870_v17, %v869_v16 }
 0x22e   : > { %v872_v19 = vpop.f32.mrb[2].mxu0 }
 0x22f   : > { %v873_v20 = vpop.f32.mrb[3].mxu0 }
 0x230   : > { %v874_v21 = vadd.f32 %v873_v20, %v872_v19 }
 0x232   : > { %v875_v22 = vpop.f32.mrb[4].mxu0  ;;  %v1077_v23 = vpack.c.bf16 %v874_v21, %v871_v18 }
 0x233   : > { %v876_v24 = vpop.f32.mrb[5].mxu0 }
 0x234   : > { %v877_v25 = vadd.f32 %v876_v24, %v875_v22  ;;  %1078 = vmatprep.subr.bf16.mxu1 %v1077_v23 }
 0x235   : > { %1080 = vmatpush3.bf16.msra.mxu1 %v1077_v23 }
 0x236   : > { %v878_v26 = vpop.f32.mrb[6].mxu0 }
 0x237   : > { %v879_v27 = vpop.f32.mrb[7].mxu0 }
 0x238   : > { %v880_v28 = vadd.f32 %v879_v27, %v878_v26 }
 0x23a   : > { %v1081_v29 = vpack.c.bf16 %v880_v28, %v877_v25  ;;  %v881_v30 = vpop.f32.mrb[8].mxu0 }
 0x23b   : > { %v882_v31 = vpop.f32.mrb[9].mxu0 }
 0x23c   : > { %v883_v0 = vadd.f32 %v882_v31, %v881_v30  ;;  %1082 = vmatprep.subr.bf16.mxu1 %v1081_v29 }
 0x23d   : > { %1084 = vmatpush3.bf16.msra.mxu1 %v1081_v29 }
 0x23e   : > { %v884_v1 = vpop.f32.mrb[10].mxu0 }
 0x23f   : > { %v885_v2 = vpop.f32.mrb[11].mxu0 }
 0x240   : > { %v886_v3 = vadd.f32 %v885_v2, %v884_v1 }
 0x242   : > { %v1085_v4 = vpack.c.bf16 %v886_v3, %v883_v0  ;;  %v887_v5 = vpop.f32.mrb[12].mxu0 }
 0x243   : > { %v888_v6 = vpop.f32.mrb[13].mxu0 }
 0x244   : > { %v889_v7 = vadd.f32 %v888_v6, %v887_v5  ;;  %1086 = vmatprep.subr.bf16.mxu1 %v1085_v4 }
 0x245   : > { %1088 = vmatpush3.bf16.msra.mxu1 %v1085_v4 }
 0x246   : > { %v890_v8 = vpop.f32.mrb[14].mxu0 }
 0x247   : > { %v891_v9 = vpop.f32.mrb[15].mxu0 }
 0x248   : > { %v892_v10 = vadd.f32 %v891_v9, %v890_v8  ;;  %v592_v8 = vmul.f32 1.5, %v1793_v35 }
 0x24a   : > { %v1089_v11 = vpack.c.bf16 %v892_v10, %v889_v7  ;;  %v893_v12 = vpop.f32.mrb[16].mxu0  ;;  %v591_v10 = vmul.f32 1.5, %v1797_v33 }
 0x24b   : > { %v894_v13 = vpop.f32.mrb[17].mxu0 }
 0x24c   : > { %v895_v14 = vadd.f32 %v894_v13, %v893_v12  ;;  %1090 = vmatprep.subr.bf16.mxu1 %v1089_v11 }
 0x24d   : > { %1092 = vmatpush3.bf16.msra.mxu1 %v1089_v11 }
 0x24e   : > { %v896_v15 = vpop.f32.mrb[18].mxu0 }
 0x24f   : > { %v897_v16 = vpop.f32.mrb[19].mxu0 }
 0x250   : > { %v898_v17 = vadd.f32 %v897_v16, %v896_v15  ;;  %v594_v15 = vmul.f32 1.5, %v1785_v39 }
 0x252   : > { %v1093_v18 = vpack.c.bf16 %v898_v17, %v895_v14  ;;  %v899_v19 = vpop.f32.mrb[20].mxu0 }
 0x253   : > { %v900_v20 = vpop.f32.mrb[21].mxu0 }
 0x254   : > { %v901_v21 = vadd.f32 %v900_v20, %v899_v19  ;;  %1094 = vmatprep.subr.bf16.mxu1 %v1093_v18 }
 0x255   : > { %1096 = vmatpush3.bf16.msra.mxu1 %v1093_v18  ;;  %v593_v18 = vmul.f32 1.5, %v1789_v37 }
 0x256   : > { %v902_v22 = vpop.f32.mrb[22].mxu0 }
 0x257   : > { %v903_v23 = vpop.f32.mrb[23].mxu0 }
 0x258   : > { %v904_v24 = vadd.f32 %v903_v23, %v902_v22  ;;  %v596_v23 = vmul.f32 1.5, %v1777_v43 }
 0x25a   : > { %v1097_v25 = vpack.c.bf16 %v904_v24, %v901_v21  ;;  %v905_v26 = vpop.f32.mrb[24].mxu0 }
 0x25b   : > { %v906_v27 = vpop.f32.mrb[25].mxu0 }
 0x25c   : > { %v907_v28 = vadd.f32 %v906_v27, %v905_v26  ;;  %1098 = vmatprep.subr.bf16.mxu1 %v1097_v25  ;;  %v595_v26 = vmul.f32 1.5, %v1781_v41 }
 0x25d   : > { %1100 = vmatpush3.bf16.msra.mxu1 %v1097_v25 }
 0x25e   : > { %v908_v29 = vpop.f32.mrb[26].mxu0 }
 0x25f   : > { %v909_v30 = vpop.f32.mrb[27].mxu0 }
 0x260   : > { %v910_v31 = vadd.f32 %v909_v30, %v908_v29 }
 0x262   : > { %v1101_v0 = vpack.c.bf16 %v910_v31, %v907_v28  ;;  %v911_v1 = vpop.f32.mrb[28].mxu0 }
 0x263   : > { %v912_v2 = vpop.f32.mrb[29].mxu0 }
 0x264   : > { %v913_v3 = vadd.f32 %v912_v2, %v911_v1  ;;  %1102 = vmatprep.subr.bf16.mxu1 %v1101_v0 }
 0x265   : > { %1104 = vmatpush3.bf16.msra.mxu1 %v1101_v0  ;;  %v597_v0 = vmul.f32 1.5, %v1773_v45 }
 0x266   : > { %v914_v4 = vpop.f32.mrb[30].mxu0 }
 0x267   : > { %v915_v5 = vpop.f32.mrb[31].mxu0 }
 0x268   : > { %v916_v6 = vadd.f32 %v915_v5, %v914_v4 }
 0x26a   : > { %v1105_v7 = vpack.c.bf16 %v916_v6, %v913_v3  ;;  %v599_v6 = vmul.f32 1.5, %v1765_v49 }
 0x26c   : > { %1106 = vmatprep.subr.bf16.mxu1 %v1105_v7 }
 0x26d   : > { %1108 = vmatpush3.bf16.msra.mxu1 %v1105_v7 }
 0x270   : > { %998 = vmatmul.mubr.f32.vlgmr.msra.gmra.mrb[0].mxu1 %v1793_v35 }
 0x271   : > { %1000 = vmatprep.mubr.f32.mxu1 %v1789_v37 }
 0x274   : > { %1001 = vmatmul.mubr.f32.gmra.mrb[2].mxu1 %v1785_v39 }
 0x275   : > { %1003 = vmatprep.mubr.f32.mxu1 %v1781_v41 }
 0x278   : > { %1004 = vmatmul.mubr.f32.gmra.mrb[4].mxu1 %v1777_v43 }
 0x279   : > { %1006 = vmatprep.mubr.f32.mxu1 %v1773_v45 }
 0x27c   : > { %1007 = vmatmul.mubr.f32.gmra.mrb[6].mxu1 %v1769_v47 }
 0x27d   : > { %1009 = vmatprep.mubr.f32.mxu1 %v1765_v49 }
 0x280   : > { %1010 = vmatmul.mubr.f32.gmra.mrb[8].mxu1 %v1761_v51 }
 0x281   : > { %1012 = vmatprep.mubr.f32.mxu1 %v1757_v53 }
 0x284   : > { %1013 = vmatmul.mubr.f32.gmra.mrb[10].mxu1 %v1753_v55 }
 0x285   : > { %1015 = vmatprep.mubr.f32.mxu1 %v1749_v57 }
 0x288   : > { %1016 = vmatmul.mubr.f32.gmra.mrb[12].mxu1 %v1745_v59 }
 0x289   : > { %1018 = vmatprep.mubr.f32.mxu1 %v1741_v61 }
 0x28c   : > { %1019 = vmatmul.mubr.f32.gmra.mrb[14].mxu1 %v1737_v63 }
 0x28d   : > { %1021 = vmatprep.mubr.f32.mxu1 %v1733_v32 }
 0x290   : > { %1022 = vmatmul.mubr.f32.gmra.mrb[16].mxu1 %v1729_v34 }
 0x291   : > { %1024 = vmatprep.mubr.f32.mxu1 %v1725_v36 }
 0x294   : > { %1025 = vmatmul.mubr.f32.gmra.mrb[18].mxu1 %v1721_v38 }
 0x295   : > { %1027 = vmatprep.mubr.f32.mxu1 %v1717_v40 }
 0x298   : > { %1028 = vmatmul.mubr.f32.gmra.mrb[20].mxu1 %v1713_v42 }
 0x299   : > { %1030 = vmatprep.mubr.f32.mxu1 %v1709_v44 }
 0x29c   : > { %1031 = vmatmul.mubr.f32.gmra.mrb[22].mxu1 %v1705_v46 }
 0x29d   : > { %1033 = vmatprep.mubr.f32.mxu1 %v1701_v48 }
 0x2a0   : > { %1034 = vmatmul.mubr.f32.gmra.mrb[24].mxu1 %v1697_v50 }
 0x2a1   : > { %1036 = vmatprep.mubr.f32.mxu1 %v1693_v52 }
 0x2a4   : > { %1037 = vmatmul.mubr.f32.gmra.mrb[26].mxu1 %v1689_v54 }
 0x2a5   : > { %1039 = vmatprep.mubr.f32.mxu1 %v1685_v56 }
 0x2a8   : > { %1040 = vmatmul.mubr.f32.gmra.mrb[28].mxu1 %v1681_v58 }
 0x2a9   : > { %1042 = vmatprep.mubr.f32.mxu1 %v1677_v60 }
 0x2ac   : > { %1043 = vmatmul.mubr.f32.gmra.mrb[30].mxu1 %v1673_v62 }
 0x343   : > { %v999_v9 = vpop.f32.mrb[0].mxu1 }
 0x344   : > { %v624_v11 = vmul.f32 0.5, %v999_v9  ;;  %v432_v12 = vpop.f32.mrb[1].mxu1 }
 0x345   : > { %v623_v13 = vmul.f32 0.5, %v432_v12  ;;  %v601_v12 = vmul.f32 1.5, %v1757_v53 }
 0x346   : > { %v2094_v35 = vsub.f32 %v592_v8, %v624_v11  }
 0x347   : > { %v2097_v33 = vsub.f32 %v591_v10, %v623_v13   ;;  %v1002_v17 = vpop.f32.mrb[2].mxu1 }
 0x348   : > { %v2343_v14 = vmov %v2094_v35  ;;  %v626_v19 = vmul.f32 0.5, %v1002_v17  ;;  %v442_v20 = vpop.f32.mrb[3].mxu1 }
 0x349   : > { %v2344_v16 = vmov %v2097_v33  ;;  %v625_v21 = vmul.f32 0.5, %v442_v20  ;;  %v598_v33 = vmul.f32 1.5, %v1769_v47  ;;  %v603_v20 = vmul.f32 1.5, %v1749_v57  ;;  %688 = vst [vmem:[#allocation5 + $0x8] sm:$0xff] (%p2191_p8), %v2343_v14 }
 0x34a   : > { %v2100_v39 = vsub.f32 %v594_v15, %v626_v19   ;;  %687 = vst [vmem:[#allocation5] sm:$0xff] (%p2191_p8), %v2344_v16 }
 0x34b   : > { %v2103_v37 = vsub.f32 %v593_v18, %v625_v21   ;;  %v1005_v25 = vpop.f32.mrb[4].mxu1 }
 0x34c   : > { %v2345_v22 = vmov %v2100_v39  ;;  %v628_v35 = vmul.f32 0.5, %v1005_v25  ;;  %v452_v27 = vpop.f32.mrb[5].mxu1 }
 0x34d   : > { %v2346_v24 = vmov %v2103_v37  ;;  %v627_v28 = vmul.f32 0.5, %v452_v27  ;;  %v600_v37 = vmul.f32 1.5, %v1761_v51  ;;  %v605_v27 = vmul.f32 1.5, %v1741_v61  ;;  %690 = vst [vmem:[#allocation5 + $0x18] sm:$0xff] (%p2191_p8), %v2345_v22 }
 0x34e   : > { %v2106_v43 = vsub.f32 %v596_v23, %v628_v35   ;;  %689 = vst [vmem:[#allocation5 + $0x10] sm:$0xff] (%p2191_p8), %v2346_v24 }
 0x34f   : > { %v2109_v41 = vsub.f32 %v595_v26, %v627_v28   ;;  %v1008_v31 = vpop.f32.mrb[6].mxu1 }
 0x350   : > { %v2347_v29 = vmov %v2106_v43  ;;  %v630_v39 = vmul.f32 0.5, %v1008_v31  ;;  %v462_v1 = vpop.f32.mrb[7].mxu1 }
 0x351   : > { %v2348_v30 = vmov %v2109_v41  ;;  %v629_v2 = vmul.f32 0.5, %v462_v1  ;;  %v602_v41 = vmul.f32 1.5, %v1753_v55  ;;  %v607_v1 = vmul.f32 1.5, %v1733_v32  ;;  %692 = vst [vmem:[#allocation5 + $0x28] sm:$0xff] (%p2191_p8), %v2347_v29 }
 0x352   : > { %v2112_v47 = vsub.f32 %v598_v33, %v630_v39   ;;  %691 = vst [vmem:[#allocation5 + $0x20] sm:$0xff] (%p2191_p8), %v2348_v30 }
 0x353   : > { %v2115_v45 = vsub.f32 %v597_v0, %v629_v2   ;;  %v1011_v5 = vpop.f32.mrb[8].mxu1 }
 0x354   : > { %v2349_v3 = vmov %v2112_v47  ;;  %v632_v43 = vmul.f32 0.5, %v1011_v5  ;;  %v472_v7 = vpop.f32.mrb[9].mxu1 }
 0x355   : > { %v2350_v4 = vmov %v2115_v45  ;;  %v631_v8 = vmul.f32 0.5, %v472_v7  ;;  %v604_v45 = vmul.f32 1.5, %v1745_v59  ;;  %v609_v7 = vmul.f32 1.5, %v1725_v36  ;;  %694 = vst [vmem:[#allocation5 + $0x38] sm:$0xff] (%p2191_p8), %v2349_v3 }
 0x356   : > { %v2118_v51 = vsub.f32 %v600_v37, %v632_v43   ;;  %693 = vst [vmem:[#allocation5 + $0x30] sm:$0xff] (%p2191_p8), %v2350_v4 }
 0x357   : > { %v2121_v49 = vsub.f32 %v599_v6, %v631_v8   ;;  %v1014_v11 = vpop.f32.mrb[10].mxu1 }
 0x358   : > { %v2351_v9 = vmov %v2118_v51  ;;  %v634_v47 = vmul.f32 0.5, %v1014_v11  ;;  %v482_v13 = vpop.f32.mrb[11].mxu1 }
 0x359   : > { %v2352_v10 = vmov %v2121_v49  ;;  %v633_v15 = vmul.f32 0.5, %v482_v13  ;;  %v606_v49 = vmul.f32 1.5, %v1737_v63  ;;  %v611_v13 = vmul.f32 1.5, %v1717_v40  ;;  %696 = vst [vmem:[#allocation5 + $0x48] sm:$0xff] (%p2191_p8), %v2351_v9 }
 0x35a   : > { %v2124_v55 = vsub.f32 %v602_v41, %v634_v47   ;;  %695 = vst [vmem:[#allocation5 + $0x40] sm:$0xff] (%p2191_p8), %v2352_v10 }
 0x35b   : > { %v2127_v53 = vsub.f32 %v601_v12, %v633_v15   ;;  %v1017_v19 = vpop.f32.mrb[12].mxu1 }
 0x35c   : > { %v2353_v17 = vmov %v2124_v55  ;;  %v636_v51 = vmul.f32 0.5, %v1017_v19  ;;  %v492_v21 = vpop.f32.mrb[13].mxu1 }
 0x35d   : > { %v2354_v18 = vmov %v2127_v53  ;;  %v635_v23 = vmul.f32 0.5, %v492_v21  ;;  %v608_v53 = vmul.f32 1.5, %v1729_v34  ;;  %v613_v21 = vmul.f32 1.5, %v1709_v44  ;;  %698 = vst [vmem:[#allocation5 + $0x58] sm:$0xff] (%p2191_p8), %v2353_v17 }
 0x35e   : > { %v2130_v59 = vsub.f32 %v604_v45, %v636_v51   ;;  %697 = vst [vmem:[#allocation5 + $0x50] sm:$0xff] (%p2191_p8), %v2354_v18 }
 0x35f   : > { %v2133_v57 = vsub.f32 %v603_v20, %v635_v23   ;;  %v1020_v35 = vpop.f32.mrb[14].mxu1 }
 0x360   : > { %v2355_v25 = vmov %v2130_v59  ;;  %v638_v55 = vmul.f32 0.5, %v1020_v35  ;;  %v502_v28 = vpop.f32.mrb[15].mxu1 }
 0x361   : > { %v2356_v26 = vmov %v2133_v57  ;;  %v637_v33 = vmul.f32 0.5, %v502_v28  ;;  %v610_v57 = vmul.f32 1.5, %v1721_v38  ;;  %700 = vst [vmem:[#allocation5 + $0x68] sm:$0xff] (%p2191_p8), %v2355_v25 }
 0x362   : > { %v2136_v63 = vsub.f32 %v606_v49, %v638_v55   ;;  %v615_v55 = vmul.f32 1.5, %v1701_v48  ;;  %699 = vst [vmem:[#allocation5 + $0x60] sm:$0xff] (%p2191_p8), %v2356_v26 }
 0x363   : > { %v2139_v61 = vsub.f32 %v605_v27, %v637_v33   ;;  %v1023_v39 = vpop.f32.mrb[16].mxu1 }
 0x364   : > { %v2357_v31 = vmov %v2136_v63  ;;  %v640_v59 = vmul.f32 0.5, %v1023_v39  ;;  %v512_v2 = vpop.f32.mrb[17].mxu1 }
 0x365   : > { %v2358_v0 = vmov %v2139_v61  ;;  %v639_v37 = vmul.f32 0.5, %v512_v2  ;;  %v612_v61 = vmul.f32 1.5, %v1713_v42  ;;  %702 = vst [vmem:[#allocation5 + $0x78] sm:$0xff] (%p2191_p8), %v2357_v31 }
 0x366   : > { %v2142_v34 = vsub.f32 %v608_v53, %v640_v59   ;;  %v617_v59 = vmul.f32 1.5, %v1693_v52  ;;  %701 = vst [vmem:[#allocation5 + $0x70] sm:$0xff] (%p2191_p8), %v2358_v0 }
 0x367   : > { %v2145_v32 = vsub.f32 %v607_v1, %v639_v37   ;;  %v1026_v43 = vpop.f32.mrb[18].mxu1 }
 0x368   : > { %v2359_v5 = vmov %v2142_v34  ;;  %v642_v63 = vmul.f32 0.5, %v1026_v43  ;;  %v522_v8 = vpop.f32.mrb[19].mxu1 }
 0x369   : > { %v2360_v6 = vmov %v2145_v32  ;;  %v641_v41 = vmul.f32 0.5, %v522_v8  ;;  %v614_v32 = vmul.f32 1.5, %v1705_v46  ;;  %704 = vst [vmem:[#allocation5 + $0x88] sm:$0xff] (%p2191_p8), %v2359_v5 }
 0x36a   : > { %v2148_v38 = vsub.f32 %v610_v57, %v642_v63   ;;  %v619_v63 = vmul.f32 1.5, %v1685_v56  ;;  %703 = vst [vmem:[#allocation5 + $0x80] sm:$0xff] (%p2191_p8), %v2360_v6 }
 0x36b   : > { %v2151_v36 = vsub.f32 %v609_v7, %v641_v41   ;;  %v1029_v47 = vpop.f32.mrb[20].mxu1 }
 0x36c   : > { %v2361_v11 = vmov %v2148_v38  ;;  %v644_v34 = vmul.f32 0.5, %v1029_v47  ;;  %v532_v15 = vpop.f32.mrb[21].mxu1 }
 0x36d   : > { %v2362_v12 = vmov %v2151_v36  ;;  %v643_v45 = vmul.f32 0.5, %v532_v15  ;;  %v616_v36 = vmul.f32 1.5, %v1697_v50  ;;  %706 = vst [vmem:[#allocation5 + $0x98] sm:$0xff] (%p2191_p8), %v2361_v11 }
 0x36e   : > { %v2154_v42 = vsub.f32 %v612_v61, %v644_v34   ;;  %v621_v34 = vmul.f32 1.5, %v1677_v60  ;;  %705 = vst [vmem:[#allocation5 + $0x90] sm:$0xff] (%p2191_p8), %v2362_v12 }
 0x36f   : > { %v2157_v40 = vsub.f32 %v611_v13, %v643_v45   ;;  %v1032_v51 = vpop.f32.mrb[22].mxu1 }
 0x370   : > { %v2363_v19 = vmov %v2154_v42  ;;  %v646_v38 = vmul.f32 0.5, %v1032_v51  ;;  %v542_v23 = vpop.f32.mrb[23].mxu1  ;;  %v2398_v51 = vmov %v2351_v9 }
 0x371   : > { %v2364_v20 = vmov %v2157_v40  ;;  %v645_v49 = vmul.f32 0.5, %v542_v23  ;;  %v618_v40 = vmul.f32 1.5, %v1689_v54  ;;  %708 = vst [vmem:[#allocation5 + $0xa8] sm:$0xff] (%p2191_p8), %v2363_v19 }
 0x372   : > { %v2160_v46 = vsub.f32 %v614_v32, %v646_v38   ;;  %v2388_v38 = vmov %v2361_v11  ;;  %707 = vst [vmem:[#allocation5 + $0xa0] sm:$0xff] (%p2191_p8), %v2364_v20 }
 0x373   : > { %v2163_v44 = vsub.f32 %v613_v21, %v645_v49   ;;  %v1035_v35 = vpop.f32.mrb[24].mxu1  ;;  %v2399_v49 = vmov %v2352_v10 }
 0x374   : > { %v2365_v27 = vmov %v2160_v46  ;;  %v648_v42 = vmul.f32 0.5, %v1035_v35  ;;  %v552_v33 = vpop.f32.mrb[25].mxu1  ;;  %v2406_v35 = vmov %v2343_v14 }
 0x375   : > { %v2366_v28 = vmov %v2163_v44  ;;  %v647_v53 = vmul.f32 0.5, %v552_v33  ;;  %v620_v44 = vmul.f32 1.5, %v1681_v58  ;;  %v2407_v33 = vmov %v2344_v16  ;;  %710 = vst [vmem:[#allocation5 + $0xb8] sm:$0xff] (%p2191_p8), %v2365_v27 }
 0x376   : > { %v2166_v50 = vsub.f32 %v616_v36, %v648_v42   ;;  %v2386_v42 = vmov %v2363_v19  ;;  %v2389_v36 = vmov %v2362_v12  ;;  %709 = vst [vmem:[#allocation5 + $0xb0] sm:$0xff] (%p2191_p8), %v2366_v28 }
 0x377   : > { %v2169_v48 = vsub.f32 %v615_v55, %v647_v53   ;;  %v1038_v39 = vpop.f32.mrb[26].mxu1  ;;  %v2396_v55 = vmov %v2353_v17  ;;  %v2397_v53 = vmov %v2354_v18 }
 0x378   : > { %v2367_v1 = vmov %v2166_v50  ;;  %v650_v46 = vmul.f32 0.5, %v1038_v39  ;;  %v562_v37 = vpop.f32.mrb[27].mxu1  ;;  %v2404_v39 = vmov %v2345_v22 }
 0x379   : > { %v2368_v2 = vmov %v2169_v48  ;;  %v649_v57 = vmul.f32 0.5, %v562_v37  ;;  %v622_v48 = vmul.f32 1.5, %v1673_v62  ;;  %v2405_v37 = vmov %v2346_v24  ;;  %712 = vst [vmem:[#allocation5 + $0xc8] sm:$0xff] (%p2191_p8), %v2367_v1 }
 0x37a   : > { %v2172_v54 = vsub.f32 %v618_v40, %v650_v46   ;;  %v2384_v46 = vmov %v2365_v27  ;;  %v2387_v40 = vmov %v2364_v20  ;;  %711 = vst [vmem:[#allocation5 + $0xc0] sm:$0xff] (%p2191_p8), %v2368_v2 }
 0x37b   : > { %v2175_v52 = vsub.f32 %v617_v59, %v649_v57   ;;  %v1041_v43 = vpop.f32.mrb[28].mxu1  ;;  %v2394_v59 = vmov %v2355_v25  ;;  %v2395_v57 = vmov %v2356_v26 }
 0x37c   : > { %v2369_v7 = vmov %v2172_v54  ;;  %v652_v50 = vmul.f32 0.5, %v1041_v43  ;;  %v572_v41 = vpop.f32.mrb[29].mxu1  ;;  %v2402_v43 = vmov %v2347_v29 }
 0x37d   : > { %v2370_v8 = vmov %v2175_v52  ;;  %v651_v61 = vmul.f32 0.5, %v572_v41  ;;  %v2403_v41 = vmov %v2348_v30  ;;  %714 = vst [vmem:[#allocation5 + $0xd8] sm:$0xff] (%p2191_p8), %v2369_v7 }
 0x37e   : > { %v2178_v58 = vsub.f32 %v620_v44, %v652_v50   ;;  %v2381_v52 = vmov %v2370_v8  ;;  %v2382_v50 = vmov %v2367_v1  ;;  %v2385_v44 = vmov %v2366_v28  ;;  %713 = vst [vmem:[#allocation5 + $0xd0] sm:$0xff] (%p2191_p8), %v2370_v8 }
 0x37f   : > { %v2181_v56 = vsub.f32 %v619_v63, %v651_v61   ;;  %v1044_v47 = vpop.f32.mrb[30].mxu1  ;;  %v2392_v63 = vmov %v2357_v31  ;;  %v2393_v61 = vmov %v2358_v0 }
 0x380   : > { %v2371_v13 = vmov %v2178_v58  ;;  %v654_v54 = vmul.f32 0.5, %v1044_v47  ;;  %v582_v45 = vpop.f32.mrb[31].mxu1  ;;  %v2400_v47 = vmov %v2349_v3  ;;  %123 = sbr.rel (!%p2191_p8) target bundleno = 209 (0xd1), region = 35 }
 0x381   : > { %v2372_v15 = vmov %v2181_v56  ;;  %v653_v32 = vmul.f32 0.5, %v582_v45  ;;  %v2378_v58 = vmov %v2371_v13  ;;  %v2401_v45 = vmov %v2350_v4  ;;  %716 = vst [vmem:[#allocation5 + $0xe8] sm:$0xff] (%p2191_p8), %v2371_v13 }
 0x382   : > { %v2184_v62 = vsub.f32 %v622_v48, %v654_v54   ;;  %v2379_v56 = vmov %v2372_v15  ;;  %v2380_v54 = vmov %v2369_v7  ;;  %v2383_v48 = vmov %v2368_v2  ;;  %715 = vst [vmem:[#allocation5 + $0xe0] sm:$0xff] (%p2191_p8), %v2372_v15 }
 0x383   : > { %v2186_v60 = vsub.f32 %v621_v34, %v653_v32   ;;  %v2390_v34 = vmov %v2359_v5  ;;  %v2391_v32 = vmov %v2360_v6 }
 0x384   : > { %v2373_v21 = vmov %v2184_v62 }
 0x385   : > { %v2374_v23 = vmov %v2186_v60  ;;  %v2376_v62 = vmov %v2373_v21  ;;  %718 = vst [vmem:[#allocation5 + $0xf8] sm:$0xff] (%p2191_p8), %v2373_v21 }
 0x386   : > { %v2377_v60 = vmov %v2374_v23  ;;  %717 = vst [vmem:[#allocation5 + $0xf0] sm:$0xff] (%p2191_p8), %v2374_v23 }
 0x387   :  { %1524 = shalt.err (!%p1521_p13)
}
 0x388   :  { %s1525_s27 = scalar_lea.hbm %s2342_s1, 4096 }
 0x389   :  { %p1526_p0 = scmp.ne.s32.totalorder %s2342_s1, %s1525_s27  ;;  %p1529_p1 = scmp.lt.u32.totalorder %s1525_s27, %s2342_s1 }
 0x38b   :  { %p1531_p2 = pnand %p1529_p1, %p1526_p0 }
 0x38d   :  { %1534 = shalt.err (!%p1531_p2)
}
 0x38e   :  { %s1807_s3 = smov 128   ;;  %s1808_s4 = smov 8  }
 0x38f   :  { %730 = dma.vmem_to_hbm [thread:$0]  %s725_s23, 4096, %s2342_s1, [#allocation4], %s1807_s3, %s1807_s3, %s1808_s4  }
 0x390   :  { %1669 = dma.done.wait [#allocation4], 4096  }
 0x391   :  { %1670 = vsyncadd [#allocation4], 4294963200 }
 0x392   :  { %734 = vsyncpa [#allocation3], 1 }
 0x393   :  { %735 = vsyncpa [#allocation4], 1 }

</bundles_post_ra>
